<compile_context>
chip_gen: v7x
topology: tpu7x:2x2x1
jax: 0.10.0
libtpu: 0.0.40
codegen_flags: <defaults>
</compile_context>

<pallas_src>
import functools

import jax
import jax.numpy as jnp
from jax.experimental import pallas as pl
from jax.experimental.pallas import tpu as pltpu


# ---------------------------------------------------------------------------
# Fused kernel: streaming global sum/max pool + MLP + sigmoid epilogue.
# ---------------------------------------------------------------------------
def _ca_kernel(x_ref, w1t_ref, w2t_ref, o_ref, sum_acc, max_acc, *,
               hw, spatial_blk, need_mask, inv_hw):
    """Grid: (batch blocks ["parallel"], spatial blocks ["arbitrary"]).

    x_ref:   (kb, C, spatial_blk) tile of x viewed as (B, C, H*W)
    w1t_ref: (C, Chp)  fc1^T with hidden dim zero-padded to a 128 multiple
    w2t_ref: (Chp, C)  fc2^T (zero-padded rows)
    o_ref:   (kb, 1, C) attention output block
    sum_acc/max_acc: (kb, C) f32 scratch accumulators (persist across j).
    """
    j = pl.program_id(1)
    last = pl.num_programs(1) - 1

    @pl.when(j == 0)
    def _():                                   # (re-)init accumulators per i
        sum_acc[...] = jnp.zeros_like(sum_acc)
        max_acc[...] = jnp.full_like(max_acc, -jnp.inf)

    def _accumulate(masked):
        tile = x_ref[...]                      # (kb, C, spatial_blk)
        if masked:
            # Padded lanes past H*W: contribute 0 to sum, -inf to max.
            lane = jax.lax.broadcasted_iota(jnp.int32, tile.shape, 2)
            valid = (j * spatial_blk + lane) < hw
            s_t = jnp.where(valid, tile, jnp.zeros_like(tile))
            m_t = jnp.where(valid, tile, jnp.full_like(tile, -jnp.inf))
        else:
            s_t = tile
            m_t = tile
        sum_acc[...] += jnp.sum(s_t, axis=-1, dtype=jnp.float32)
        max_acc[...] = jnp.maximum(
            max_acc[...], jnp.max(m_t, axis=-1).astype(jnp.float32))

    if need_mask:
        # Only the last spatial tile pays the iota/compare/select mask cost;
        # every full tile takes the plain reduce path.
        @pl.when(j != last)
        def _():
            _accumulate(False)

        @pl.when(j == last)
        def _():
            _accumulate(True)
    else:
        _accumulate(False)

    @pl.when(j == last)
    def _():
        # Epilogue (negligible flops): mean scale, fc1/relu/fc2 on both the
        # avg and max paths, add, sigmoid -- all on the VMEM-resident pools.
        avg = sum_acc[...] * inv_hw            # (kb, C) mean pool
        mx = max_acc[...]                      # (kb, C) max pool
        w1t = w1t_ref[...]                     # (C, Chp)
        w2t = w2t_ref[...]                     # (Chp, C)

        def mlp(v):
            h = jnp.dot(v, w1t, preferred_element_type=jnp.float32)   # fc1
            h = jnp.maximum(h, 0.0)                                   # relu
            return jnp.dot(h, w2t, preferred_element_type=jnp.float32)  # fc2

        att = jax.nn.sigmoid(mlp(avg) + mlp(mx))                      # (kb, C)
        o_ref[...] = att.astype(o_ref.dtype).reshape(o_ref.shape)


# ---------------------------------------------------------------------------
# Wrapper
# ---------------------------------------------------------------------------
def channel_attention(x, w_fc1, w_fc2, *, tile_bytes_target=8 * 1024 * 1024):
    """x: (B, C, H, W); w_fc1: (C//16, C, 1, 1); w_fc2: (C, C//16, 1, 1).
    Returns (B, C, 1, 1), matching the PyTorch module's output shape."""
    B, C, H, W = x.shape
    Ch, HW = w_fc1.shape[0], H * W
    assert jnp.issubdtype(x.dtype, jnp.floating), "float input required (-inf mask)"
    assert w_fc1.shape == (Ch, C, 1, 1) and w_fc2.shape == (C, Ch, 1, 1)

    itemsize = x.dtype.itemsize

    # Squeeze the 1x1 convs to dense matrices, pre-transpose for row-vector
    # matmuls, and zero-pad the tiny hidden dim (C//16) up to a 128-lane
    # multiple (relu(0)=0 and zero rows of w2t keep the math exact).
    w1t = w_fc1.reshape(Ch, C).T.astype(jnp.float32)        # (C, Ch)
    w2t = w_fc2.reshape(C, Ch).T.astype(jnp.float32)        # (Ch, C)
    chp = -(-Ch // 128) * 128
    if chp != Ch:
        w1t = jnp.pad(w1t, ((0, 0), (0, chp - Ch)))
        w2t = jnp.pad(w2t, ((0, chp - Ch), (0, 0)))
    w_bytes = 2 * C * chp * 4

    # ---- Tile selection (byte-budgeted, generation-friendly) ---------------
    # ~8 MiB per input tile (16 MiB double-buffered): amortizes the ~0.35 us
    # per-step overhead even at v7x HBM speeds, stays well under v7x's 64 MiB
    # physical VMEM.  Budget in BYTES so bf16 inputs keep the same efficiency.
    budget_bytes = max(tile_bytes_target - 2 * w_bytes, 2 * 1024 * 1024)
    elems_budget = max(budget_bytes // itemsize, 8 * 128)

    # Batch-block size kb (tile covers kb whole batches x all C channels, so
    # the MLP epilogue can fuse per block).  Keep >=2 batch blocks when B > 1
    # so the "parallel" grid axis shards across v7x's two TensorCores.
    kb = max(1, min(B, elems_budget // (C * min(HW, 128))))
    if B > 1:
        kb = min(kb, -(-B // 2))

    # Spatial block: biggest 128-multiple under the leftover budget; prefer
    # one that evenly divides H*W so no step ever needs lane masking.
    spatial_budget = max(128, elems_budget // (kb * C))
    if HW <= spatial_budget:
        spatial_blk = HW                     # full dim (always legal)
    else:
        spatial_blk = (spatial_budget // 128) * 128
        for cand in range(spatial_blk, max(spatial_blk // 2, 128) - 1, -128):
            if HW % cand == 0:
                spatial_blk = cand
                break
    need_mask = (HW % spatial_blk) != 0

    grid = (pl.cdiv(B, kb), pl.cdiv(HW, spatial_blk))
    # TODO(synk): for B == 1 the parallel axis has one block, so v7x runs
    # stage 1 on a single TensorCore; a 2-way spatial split with partial
    # accumulators merged in the epilogue would engage the second TC.

    xf = x.reshape(B, C, HW)                 # free view for contiguous NCHW

    tile_bytes = kb * C * spatial_blk * itemsize
    vmem_limit = int(min(48 * 1024 * 1024,
                         max(32 * 1024 * 1024,
                             2 * tile_bytes + 2 * w_bytes + 2 * 1024 * 1024)))

    att = pl.pallas_call(
        functools.partial(_ca_kernel, hw=HW, spatial_blk=spatial_blk,
                          need_mask=need_mask, inv_hw=1.0 / HW),
        out_shape=jax.ShapeDtypeStruct((B, 1, C), x.dtype),
        grid=grid,
        in_specs=[
            pl.BlockSpec((kb, C, spatial_blk), lambda i, j: (i, 0, j)),
            pl.BlockSpec((C, chp), lambda i, j: (0, 0)),
            pl.BlockSpec((chp, C), lambda i, j: (0, 0)),
        ],
        # NOTE: padded batch rows of a partial last block carry garbage in the
        # scratch accumulators but are never written back by Pallas.
        out_specs=pl.BlockSpec((kb, 1, C), lambda i, j: (i, 0, 0)),
        scratch_shapes=[pltpu.VMEM((kb, C), jnp.float32),
                        pltpu.VMEM((kb, C), jnp.float32)],
        compiler_params=pltpu.CompilerParams(
            dimension_semantics=("parallel", "arbitrary"),
            vmem_limit_bytes=vmem_limit),
        cost_estimate=pl.CostEstimate(
            flops=int(2 * B * C * HW + 8 * B * C * chp),
            transcendentals=int(2 * B * C),
            bytes_accessed=int(B * C * HW * itemsize + w_bytes
                               + B * C * itemsize)),
    )(xf, w1t, w2t)

    return att.reshape(B, C, 1, 1)


def channel_attention_ref(x, w_fc1, w_fc2):
    """Pure-JAX reference for correctness checking."""
    B, C, H, W = x.shape
    Ch = w_fc1.shape[0]
    w1 = w_fc1.reshape(Ch, C)
    w2 = w_fc2.reshape(C, Ch)
    avg = jnp.mean(x, axis=(2, 3))
    mx = jnp.max(x, axis=(2, 3))

    def mlp(v):
        return jnp.maximum(v @ w1.T, 0.0) @ w2.T

    return jax.nn.sigmoid(mlp(avg) + mlp(mx)).reshape(B, C, 1, 1)


if __name__ == "__main__":
    key = jax.random.PRNGKey(0)
    # in_planes must be >= 16 (module does in_planes // 16); keep it small.
    B, C, H, W = 2, 32, 16, 16
    Ch = C // 16

    kx, k1, k2 = jax.random.split(key, 3)
    x = jax.random.normal(kx, (B, C, H, W), dtype=jnp.float32)
    # Deterministic synthetic init matching nn.Conv2d weight shapes (bias=False).
    w_fc1 = jax.random.normal(k1, (Ch, C, 1, 1), dtype=jnp.float32) / jnp.sqrt(C)
    w_fc2 = jax.random.normal(k2, (C, Ch, 1, 1), dtype=jnp.float32) / jnp.sqrt(Ch)

    out = jax.block_until_ready(channel_attention(x, w_fc1, w_fc2))
    ref = channel_attention_ref(x, w_fc1, w_fc2)
    assert out.shape == (B, C, 1, 1), out.shape
    assert jnp.allclose(out, ref, atol=1e-5, rtol=1e-5), "mismatch vs reference"
    print("KERNEL_OK")
</pallas_src>

<mosaic_0001>
module attributes {stable_mosaic.version = 11 : i64} {
  func.func @_ca_kernel(%arg0: i32, %arg1: i32, %arg2: memref<1x32x256xf32, #tpu.memory_space<vmem>>, %arg3: memref<32x128xf32, #tpu.memory_space<vmem>>, %arg4: memref<128x32xf32, #tpu.memory_space<vmem>>, %arg5: memref<1x1x32xf32, #tpu.memory_space<vmem>>, %arg6: memref<1x32xf32, #tpu.memory_space<vmem>>, %arg7: memref<1x32xf32, #tpu.memory_space<vmem>>) attributes {dimension_semantics = [#tpu.dimension_semantics<parallel>, #tpu.dimension_semantics<arbitrary>], iteration_bounds = array<i64: 2, 1>, scalar_prefetch = 0 : i64, scratch_operands = 2 : i64, tpu.core_type = #tpu.core_type<tc>, window_params = [{transform_indices = @transform_0, window_bounds = array<i64: 1, 32, 256>}, {pipeline_mode = #tpu.pipeline_mode<synchronous>, transform_indices = @transform_1, window_bounds = array<i64: 32, 128>}, {pipeline_mode = #tpu.pipeline_mode<synchronous>, transform_indices = @transform_2, window_bounds = array<i64: 128, 32>}, {transform_indices = @transform_3, window_bounds = array<i64: 1, 1, 32>}]} {
    %c0_i32 = arith.constant 0 : i32
    %0 = arith.cmpi eq, %arg1, %c0_i32 : i32
    %1 = arith.extui %0 : i1 to i32
    %c0_i32_0 = arith.constant 0 : i32
    %2 = arith.cmpi ne, %1, %c0_i32_0 : i32
    scf.if %2 {
      %cst_14 = arith.constant 0.000000e+00 : f32
      %15 = vector.broadcast %cst_14 : f32 to vector<1x32xf32>
      %c0_15 = arith.constant 0 : index
      %c0_16 = arith.constant 0 : index
      %16 = vector.load %arg6[%c0_15, %c0_16] : memref<1x32xf32, #tpu.memory_space<vmem>>, vector<1x32xf32>
      tpu.vector_store %arg6[%c0_15, %c0_16], %15 {strides = array<i32>} : memref<1x32xf32, #tpu.memory_space<vmem>>, vector<1x32xf32>,
      %cst_17 = arith.constant 0xFF800000 : f32
      %17 = vector.broadcast %cst_17 : f32 to vector<1x32xf32>
      %c0_18 = arith.constant 0 : index
      %c0_19 = arith.constant 0 : index
      %18 = vector.load %arg7[%c0_18, %c0_19] : memref<1x32xf32, #tpu.memory_space<vmem>>, vector<1x32xf32>
      tpu.vector_store %arg7[%c0_18, %c0_19], %17 {strides = array<i32>} : memref<1x32xf32, #tpu.memory_space<vmem>>, vector<1x32xf32>,
    } else {
    }
    %c0 = arith.constant 0 : index
    %c0_1 = arith.constant 0 : index
    %c0_2 = arith.constant 0 : index
    %3 = vector.load %arg2[%c0, %c0_1, %c0_2] : memref<1x32x256xf32, #tpu.memory_space<vmem>>, vector<1x32x256xf32>
    %c0_3 = arith.constant 0 : index
    %c0_4 = arith.constant 0 : index
    %4 = vector.load %arg6[%c0_3, %c0_4] : memref<1x32xf32, #tpu.memory_space<vmem>>, vector<1x32xf32>
    %cst = arith.constant dense<0.000000e+00> : vector<1x32xf32>
    %5 = vector.multi_reduction <add>, %3, %cst [2] : vector<1x32x256xf32> to vector<1x32xf32>
    %6 = arith.addf %4, %5 : vector<1x32xf32>
    %c0_5 = arith.constant 0 : index
    %c0_6 = arith.constant 0 : index
    %7 = vector.load %arg6[%c0_5, %c0_6] : memref<1x32xf32, #tpu.memory_space<vmem>>, vector<1x32xf32>
    tpu.vector_store %arg6[%c0_5, %c0_6], %6 {strides = array<i32>} : memref<1x32xf32, #tpu.memory_space<vmem>>, vector<1x32xf32>,
    %c0_7 = arith.constant 0 : index
    %c0_8 = arith.constant 0 : index
    %8 = vector.load %arg7[%c0_7, %c0_8] : memref<1x32xf32, #tpu.memory_space<vmem>>, vector<1x32xf32>
    %cst_9 = arith.constant dense<0xFF800000> : vector<1x32xf32>
    %9 = vector.multi_reduction <maximumf>, %3, %cst_9 [2] : vector<1x32x256xf32> to vector<1x32xf32>
    %10 = arith.maximumf %8, %9 : vector<1x32xf32>
    %c0_10 = arith.constant 0 : index
    %c0_11 = arith.constant 0 : index
    %11 = vector.load %arg7[%c0_10, %c0_11] : memref<1x32xf32, #tpu.memory_space<vmem>>, vector<1x32xf32>
    tpu.vector_store %arg7[%c0_10, %c0_11], %10 {strides = array<i32>} : memref<1x32xf32, #tpu.memory_space<vmem>>, vector<1x32xf32>,
    %c0_i32_12 = arith.constant 0 : i32
    %12 = arith.cmpi eq, %arg1, %c0_i32_12 : i32
    %13 = arith.extui %12 : i1 to i32
    %c0_i32_13 = arith.constant 0 : i32
    %14 = arith.cmpi ne, %13, %c0_i32_13 : i32
    scf.if %14 {
      %c0_14 = arith.constant 0 : index
      %c0_15 = arith.constant 0 : index
      %15 = vector.load %arg6[%c0_14, %c0_15] : memref<1x32xf32, #tpu.memory_space<vmem>>, vector<1x32xf32>
      %cst_16 = arith.constant 3.906250e-03 : f32
      %16 = vector.broadcast %cst_16 : f32 to vector<1x32xf32>
      %17 = arith.mulf %15, %16 : vector<1x32xf32>
      %c0_17 = arith.constant 0 : index
      %c0_18 = arith.constant 0 : index
      %18 = vector.load %arg7[%c0_17, %c0_18] : memref<1x32xf32, #tpu.memory_space<vmem>>, vector<1x32xf32>
      %c0_19 = arith.constant 0 : index
      %c0_20 = arith.constant 0 : index
      %19 = vector.load %arg3[%c0_19, %c0_20] : memref<32x128xf32, #tpu.memory_space<vmem>>, vector<32x128xf32>
      %c0_21 = arith.constant 0 : index
      %c0_22 = arith.constant 0 : index
      %20 = vector.load %arg4[%c0_21, %c0_22] : memref<128x32xf32, #tpu.memory_space<vmem>>, vector<128x32xf32>
      %cst_23 = arith.constant dense<0.000000e+00> : vector<1x128xf32>
      %21 = tpu.matmul %17, %19, %cst_23 {dimension_numbers = #tpu.dot_dimension_numbers<[1], [0], [0], [1], [0, 0, 1, 1], [], []>} : vector<1x32xf32>, vector<32x128xf32>, vector<1x128xf32> -> vector<1x128xf32>
      %cst_24 = arith.constant 0.000000e+00 : f32
      %22 = vector.broadcast %cst_24 : f32 to vector<1x128xf32>
      %23 = arith.maximumf %21, %22 : vector<1x128xf32>
      %cst_25 = arith.constant dense<0.000000e+00> : vector<1x32xf32>
      %24 = tpu.matmul %23, %20, %cst_25 {dimension_numbers = #tpu.dot_dimension_numbers<[1], [0], [0], [1], [0, 0, 1, 1], [], []>} : vector<1x128xf32>, vector<128x32xf32>, vector<1x32xf32> -> vector<1x32xf32>
      %cst_26 = arith.constant dense<0.000000e+00> : vector<1x128xf32>
      %25 = tpu.matmul %18, %19, %cst_26 {dimension_numbers = #tpu.dot_dimension_numbers<[1], [0], [0], [1], [0, 0, 1, 1], [], []>} : vector<1x32xf32>, vector<32x128xf32>, vector<1x128xf32> -> vector<1x128xf32>
      %cst_27 = arith.constant 0.000000e+00 : f32
      %26 = vector.broadcast %cst_27 : f32 to vector<1x128xf32>
      %27 = arith.maximumf %25, %26 : vector<1x128xf32>
      %cst_28 = arith.constant dense<0.000000e+00> : vector<1x32xf32>
      %28 = tpu.matmul %27, %20, %cst_28 {dimension_numbers = #tpu.dot_dimension_numbers<[1], [0], [0], [1], [0, 0, 1, 1], [], []>} : vector<1x128xf32>, vector<128x32xf32>, vector<1x32xf32> -> vector<1x32xf32>
      %29 = arith.addf %24, %28 : vector<1x32xf32>
      %30 = arith.negf %29 : vector<1x32xf32>
      %31 = math.exp %30 : vector<1x32xf32>
      %cst_29 = arith.constant 1.000000e+00 : f32
      %32 = vector.broadcast %cst_29 : f32 to vector<1x32xf32>
      %33 = arith.addf %32, %31 : vector<1x32xf32>
      %34 = arith.divf %32, %33 : vector<1x32xf32>
      %35 = vector.shape_cast %34 : vector<1x32xf32> to vector<1x1x32xf32>
      %c0_30 = arith.constant 0 : index
      %c0_31 = arith.constant 0 : index
      %c0_32 = arith.constant 0 : index
      %36 = vector.load %arg5[%c0_30, %c0_31, %c0_32] : memref<1x1x32xf32, #tpu.memory_space<vmem>>, vector<1x1x32xf32>
      tpu.vector_store %arg5[%c0_30, %c0_31, %c0_32], %35 {strides = array<i32>} : memref<1x1x32xf32, #tpu.memory_space<vmem>>, vector<1x1x32xf32>,
    } else {
    }
    return
  }
  func.func @transform_0(%arg0: i32, %arg1: i32) -> (i32, i32, i32) {
    %c0_i32 = arith.constant 0 : i32
    %c0_i32_0 = arith.constant 0 : i32
    return %arg0, %c0_i32, %arg1 : i32, i32, i32
  }
  func.func @transform_1(%arg0: i32, %arg1: i32) -> (i32, i32) {
    %c0_i32 = arith.constant 0 : i32
    %c0_i32_0 = arith.constant 0 : i32
    %c0_i32_1 = arith.constant 0 : i32
    return %c0_i32, %c0_i32_0 : i32, i32
  }
  func.func @transform_2(%arg0: i32, %arg1: i32) -> (i32, i32) {
    %c0_i32 = arith.constant 0 : i32
    %c0_i32_0 = arith.constant 0 : i32
    %c0_i32_1 = arith.constant 0 : i32
    return %c0_i32, %c0_i32_0 : i32, i32
  }
  func.func @transform_3(%arg0: i32, %arg1: i32) -> (i32, i32, i32) {
    %c0_i32 = arith.constant 0 : i32
    %c0_i32_0 = arith.constant 0 : i32
    %c0_i32_1 = arith.constant 0 : i32
    return %arg0, %c0_i32, %c0_i32_0 : i32, i32, i32
  }
}

</mosaic_0001>

<bundles_post_ra>
// kernel: tpu_custom_call.1
= control target key start
LH: loop header
LB: loop body
LE: loop exit
PB: predicated region body
PF: predicated region fallthrough
CT: control target
= control target key end

     0   :  { %8 = vsyncpa [#allocation5], 0  ;;  %s2152_s0 = inlined_call_operand.vmem [shape: f32[2,32,256], index: 0, kind: input, shape index: {}]   ;;  %s2153_s1 = inlined_call_operand.vmem [shape: f32[32,128], index: 1, kind: input, shape index: {}]   ;;  %s2154_s2 = inlined_call_operand.vmem [shape: f32[128,32], index: 2, kind: input, shape index: {}]   ;;  %s2155_s3 = inlined_call_operand.hbm [shape: f32[2,1,32], index: 3, kind: output, shape index: {}]  }
   0x1   :  { %10 = vsyncpa [#allocation5 + $0x1], 0  ;;  %s1787_s12 = smov 0   ;;  %s1789_s13 = smov 0  }
   0x2   :  { %s1791_s14 = smov 0   ;;  %s1793_s15 = smov 0  }
   0x3   :  { %s1795_s16 = smov 0   ;;  %s1797_s17 = smov 0  }
   0x4 LB: > { %s1402_s18 = sadd.s32 4294967295, %s1758_s17   ;;  %s1403_s19 = sadd.s32 4294967294, %s1758_s17   ;;  %s1758_s17 = sphi %s1797_s17, %s16_s17   ;;  %s1754_s16 = sphi %s1795_s16, %s2162_s16   ;;  %s1750_s15 = sphi %s1793_s15, %s2161_s15   ;;  %s1746_s14 = sphi %s1791_s14, %s2160_s14   ;;  %s1742_s13 = sphi %s1789_s13, %s2159_s13   ;;  %s1738_s12 = sphi %s1787_s12, %s2158_s12  }
   0x5   : > { %s28_s20 = sadd.s32 1, %s1754_s16  ;;  %s105_s21 = sadd.s32 1, %s1746_s14 }
   0x6   : > { %p30_p0 = scmp.ge.s32.totalorder %s28_s20, 2  ;;  %p115_p1 = scmp.ne.s32.totalorder %s1746_s14, %s1742_s13 }
   0x7   : > { %p116_p2 = scmp.eq.s32.totalorder %s1402_s18, 1  ;;  %p121_p3 = scmp.ne.s32.totalorder %s1742_s13, %s1738_s12 }
   0x8   : > { %s2164_s20 = smov (%p30_p0, %s28_s20), 0  ;;  %p122_p5 = scmp.eq.s32.totalorder %s1403_s19, 1 }
   0x9   : > { %p1827_p4 = por %p116_p2, %p115_p1  ;;  %s102_s23 = ssub.s32 %s1754_s16, %s2164_s20 }
   0xa   : > { %p1406_p6 = scmp.ge.s32.totalorder %s1758_s17, 1  ;;  %p103_p7 = scmp.eq.s32.totalorder %s102_s23, 0 }
   0xb   : > { %p1834_p8 = por %p122_p5, %p121_p3  ;;  %p159_p9 = scmp.lt.s32.totalorder %s1758_s17, 3 }
   0xc   : > { %s1840_s25 = scalar_select %p103_p7, %s1746_s14, %s105_s21  }
   0xd   : > { %p160_p10 = pnand %p1406_p6, %p159_p9 }
   0xe   : > { %p187_p11 = scmp.lt.s32.totalorder (!%p160_p10), %s1750_s15, 1  ;;  %v1760_v16 = vmov (!%p160_p10), 0   ;;  %v228_v17 = vlaneseq (!%p160_p10)  ;;  %v1761_v18 = vmov (!%p160_p10), 1966171168   ;;  %vm200_vm0 = vcmask (!%p160_p10), 253952   ;;  %s184_s10 = sand.u32 (!%p160_p10), 1, %s1742_s13  }
   0xf   : > { %163 = sbr.rel (%p160_p10) target bundleno = 833 (0x341), region = 32  ;;  %1674 = vset.pattern.permute.xlu0 (!%p160_p10), %v1760_v16  ;;  %1675 = vset.pattern.permute.xlu1 (!%p160_p10), %v1760_v16  ;;  %v361_v19 = vunpack.c.l.s4 (!%p160_p10), %v1761_v18  ;;  %vm1765_vm1 = vmmov (!%p160_p10), 0   ;;  %vm575_vm2 = vcmask (!%p160_p10), 130112   ;;  %vm582_vm3 = vcmask (!%p160_p10), 195712   ;;  %s1412_s11 = sshll.u32 (!%p160_p10), %s1750_s15, 4 }
  0x10   : > { %v1848_v20 = vshrl.u32 (!%p160_p10), %v228_v17, 7  ;;  %vm589_vm4 = vcmask (!%p160_p10), 261312   ;;  %vm1024_vm5 = vcmask (!%p160_p10), 261120   ;;  %s185_s18 = scalar_lea.vmem (!%p160_p10), [#allocation4], %s184_s10 }
  0x11   : > { %v362_v21 = vunpack.c.0.s8 (!%p160_p10), %v361_v19  ;;  %s1333_s19 = sshll.u32 (!%p160_p10), %s185_s18, 4  ;;  %s2106_s19 = int_to_ptr.vmem [resolvable:$true] %s1333_s19 }
  0x12   : > { %v1851_v22 = vsub.s32 (!%p160_p10), 0, %v1848_v20  ;;  %v1854_v23 = vsub.s32 (!%p160_p10), 1, %v1848_v20  ;;  %v1857_v24 = vsub.s32 (!%p160_p10), 2, %v1848_v20  ;;  %v1860_v25 = vsub.s32 (!%p160_p10), 3, %v1848_v20  ;;  %s1680_s28 = scalar_lea.vmem (!%p160_p10), %s2106_s19, 16 }
  0x13   : > { %v1863_v26 = vsub.s32 (!%p160_p10), 4, %v1848_v20  ;;  %v1866_v27 = vsub.s32 (!%p160_p10), 5, %v1848_v20  ;;  %v1869_v28 = vsub.s32 (!%p160_p10), 6, %v1848_v20  ;;  %v1872_v29 = vsub.s32 (!%p160_p10), 7, %v1848_v20  ;;  %p1681_p12 = scmp.ne.s32.totalorder (!%p160_p10), %s2106_s19, %s1680_s28 }
  0x14   : > { %v1875_v31 = vsub.s32 (!%p160_p10), %v362_v21, %v1848_v20 }
  0x15   : > { %p1682_p13 = pnand (!%p160_p10), %p1681_p12, %p1827_p4 }
  0x16   : > { %s188_s26 = scalar_select %p187_p11, %s1750_s15, 1 }
  0x17   : > { %p1683_p0 = pneg %p1682_p13  ;;  %s1766_s15 = smov [#allocation4]  }
  0x18   : > { %s1415_s27 = sshll.u32 %s188_s26, 6  ;;  %s2104_s26 = scalar_lea.hbm %s2155_s3, %s1412_s11 }
  0x19   : > { %s194_s30 = scalar_lea.vmem %s2152_s0, %s1415_s27  ;;  %s1321_s27 = scalar_lea.sflag [#allocation5], %s184_s10 }
  0x1a   : > { %v203_v0 = vld [vmem:[%s194_s30] sm:$0xff]  ;;  %v204_v1 = vld [vmem:[%s194_s30 + $0x8] sm:$0xff]  ;;  %v205_v2 = vld [vmem:[%s194_s30 + $0x10] sm:$0xff]  ;;  %s1684_s29 = sshll.u32 %s1766_s15, 4  ;;  %s1685_s29 = int_to_ptr.vmem [resolvable:$false] %s1684_s29 }
  0x1b   : > { %v212_v3 = vadd.f32 %v204_v1, %v203_v0  ;;  %v206_v4 = vld [vmem:[%s194_s30 + $0x18] sm:$0xff]  ;;  %v207_v5 = vld [vmem:[%s194_s30 + $0x20] sm:$0xff]  ;;  %v208_v6 = vld [vmem:[%s194_s30 + $0x28] sm:$0xff]  ;;  %v610_v12 = vmax.f32 %v203_v0, %v204_v1  ;;  %p1687_p1 = scmp.lt.s32.totalorder %s2106_s19, %s1685_s29 }
  0x1c   : > { %v218_v7 = vadd.f32 %v208_v6, %v207_v5  ;;  %v209_v8 = vld [vmem:[%s194_s30 + $0x30] sm:$0xff]  ;;  %v210_v9 = vld [vmem:[%s194_s30 + $0x38] sm:$0xff]  ;;  %v215_v10 = vadd.f32 %v206_v4, %v205_v2  ;;  %v613_v13 = vmax.f32 %v205_v2, %v206_v4  ;;  %v616_v14 = vmax.f32 %v207_v5, %v208_v6  ;;  %s1686_s30 = scalar_lea.vmem %s1685_s29, 32 }
  0x1d   : > { %213 = vadd.xlane.f32.xlu0 %v212_v3  ;;  %v221_v11 = vadd.f32 %v210_v9, %v209_v8  ;;  %v619_v15 = vmax.f32 %v209_v8, %v210_v9  ;;  %p1688_p2 = scmp.lt.s32.totalorder %s1686_s30, %s1680_s28 }
  0x1e   : > { %219 = vadd.xlane.f32.xlu1 %v218_v7 }
  0x1f   : > { %p1689_p3 = por %p1688_p2, %p1687_p1 }
  0x21   : > { %216 = vadd.xlane.f32.xlu0 %v215_v10  ;;  %p1690_p5 = pnand %p1689_p3, %p1683_p0 }
  0x22   : > { %222 = vadd.xlane.f32.xlu1 %v221_v11 }
  0x25   : > { %611 = vmax.xlane.f32.xlu0 %v610_v12 }
  0x26   : > { %614 = vmax.xlane.f32.xlu1 %v613_v13 }
  0x29   : > { %617 = vmax.xlane.f32.xlu0 %v616_v14 }
  0x2a   : > { %620 = vmax.xlane.f32.xlu1 %v619_v15 }
  0xaa   : > { %v214_v30 = vpop.xlane.xlu0 %213 }
  0xab   : > { %v220_v32 = vpop.xlane.xlu1 %219  ;;  %v231_v33 = vrot.slane %v214_v30, %v1851_v22  ;;  %v235_v34 = vrot.slane %v214_v30, %v1854_v23  ;;  %v239_v35 = vrot.slane %v214_v30, %v1857_v24  ;;  %v243_v36 = vrot.slane %v214_v30, %v1860_v25 }
  0xac   : > { %v247_v37 = vrot.slane %v214_v30, %v1863_v26  ;;  %v251_v38 = vrot.slane %v214_v30, %v1866_v27  ;;  %v255_v39 = vrot.slane %v214_v30, %v1869_v28  ;;  %v259_v40 = vrot.slane %v214_v30, %v1872_v29 }
  0xad   : > { %v356_v41 = vcombine.low %v231_v33, %v235_v34  ;;  %v357_v42 = vcombine.low %v239_v35, %v243_v36  ;;  %v295_v43 = vrot.slane %v220_v32, %v1851_v22  ;;  %v299_v44 = vrot.slane %v220_v32, %v1854_v23 }
  0xae   : > { %v217_v45 = vpop.xlane.xlu0 %216  ;;  %v358_v46 = vcombine.low %v247_v37, %v251_v38  ;;  %v359_v47 = vcombine.low %v255_v39, %v259_v40  ;;  %v303_v48 = vrot.slane %v220_v32, %v1857_v24  ;;  %v307_v49 = vrot.slane %v220_v32, %v1860_v25 }
  0xaf   : > { %v366_v50 = vrot.slane %v356_v41, %v1875_v31  ;;  %v373_v51 = vrot.slane %v357_v42, %v1875_v31  ;;  %v263_v52 = vrot.slane %v217_v45, %v1851_v22  ;;  %v267_v53 = vrot.slane %v217_v45, %v1854_v23  ;;  %v223_v6 = vpop.xlane.xlu1 %222 }
  0xb0   : > { %v380_v54 = vrot.slane %v358_v46, %v1875_v31  ;;  %v387_v55 = vrot.slane %v359_v47, %v1875_v31  ;;  %v271_v56 = vrot.slane %v217_v45, %v1857_v24  ;;  %v275_v57 = vrot.slane %v217_v45, %v1860_v25 }
  0xb1   : > { %v388_v58 = vcombine.low %v366_v50, %v373_v51  ;;  %v279_v59 = vrot.slane %v217_v45, %v1863_v26  ;;  %v283_v60 = vrot.slane %v217_v45, %v1866_v27  ;;  %v287_v61 = vrot.slane %v217_v45, %v1869_v28 }
  0xb2   : > { %v389_v62 = vcombine.low %v380_v54, %v387_v55  ;;  %v291_v63 = vrot.slane %v217_v45, %v1872_v29  ;;  %v405_v0 = vcombine.low %v263_v52, %v267_v53  ;;  %v406_v1 = vcombine.low %v271_v56, %v275_v57  ;;  %v612_v42 = vpop.xlane.xlu0 %611 }
  0xb3   : > { %v396_v2 = vrot.slane %v388_v58, %v1875_v31  ;;  %v407_v3 = vcombine.low %v279_v59, %v283_v60  ;;  %v311_v4 = vrot.slane %v220_v32, %v1863_v26  ;;  %v315_v5 = vrot.slane %v220_v32, %v1866_v27  ;;  %v615_v59 = vpop.xlane.xlu1 %614 }
  0xb4   : > { %v403_v7 = vrot.slane %v389_v62, %v1875_v31  ;;  %v408_v8 = vcombine.low %v287_v61, %v291_v63  ;;  %v415_v9 = vrot.slane %v405_v0, %v1875_v31  ;;  %v422_v10 = vrot.slane %v406_v1, %v1875_v31 }
  0xb5   : > { %v429_v11 = vrot.slane %v407_v3, %v1875_v31  ;;  %v319_v12 = vrot.slane %v220_v32, %v1869_v28  ;;  %v323_v13 = vrot.slane %v220_v32, %v1872_v29  ;;  %v454_v14 = vcombine.low %v295_v43, %v299_v44 }
  0xb6   : > { %v404_v15 = vcombine.low %v396_v2, %v403_v7  ;;  %v436_v16 = vrot.slane %v408_v8, %v1875_v31  ;;  %v437_v18 = vcombine.low %v415_v9, %v422_v10  ;;  %v455_v19 = vcombine.low %v303_v48, %v307_v49 }
  0xb7   : > { %v456_v21 = vcombine.low %v311_v4, %v315_v5  ;;  %v457_v30 = vcombine.low %v319_v12, %v323_v13  ;;  %v464_v33 = vrot.slane %v454_v14, %v1875_v31  ;;  %v327_v34 = vrot.slane %v223_v6, %v1851_v22 }
  0xb8   : > { %553 = vperm.xlu0 %1674, %v404_v15   ;;  %v438_v35 = vcombine.low %v429_v11, %v436_v16  ;;  %v445_v36 = vrot.slane %v437_v18, %v1875_v31  ;;  %v471_v37 = vrot.slane %v455_v19, %v1875_v31  ;;  %v331_v32 = vrot.slane %v223_v6, %v1854_v23 }
  0xb9   : > { %v478_v38 = vrot.slane %v456_v21, %v1875_v31  ;;  %v485_v39 = vrot.slane %v457_v30, %v1875_v31  ;;  %v335_v40 = vrot.slane %v223_v6, %v1857_v24  ;;  %v339_v41 = vrot.slane %v223_v6, %v1860_v25  ;;  %v618_v30 = vpop.xlane.xlu0 %617 }
  0xba   : > { %v452_v43 = vrot.slane %v438_v35, %v1875_v31  ;;  %v486_v44 = vcombine.low %v464_v33, %v471_v37  ;;  %v343_v45 = vrot.slane %v223_v6, %v1863_v26  ;;  %v347_v46 = vrot.slane %v223_v6, %v1866_v27 }
  0xbb   : > { %v487_v47 = vcombine.low %v478_v38, %v485_v39  ;;  %v351_v48 = vrot.slane %v223_v6, %v1869_v28  ;;  %v355_v49 = vrot.slane %v223_v6, %v1872_v29  ;;  %v503_v50 = vcombine.low %v327_v34, %v331_v32 }
  0xbc   : > { %v453_v51 = vcombine.low %v445_v36, %v452_v43  ;;  %v494_v52 = vrot.slane %v486_v44, %v1875_v31  ;;  %v504_v53 = vcombine.low %v335_v40, %v339_v41  ;;  %v505_v54 = vcombine.low %v343_v45, %v347_v46 }
  0xbd   : > { %v501_v55 = vrot.slane %v487_v47, %v1875_v31  ;;  %v506_v56 = vcombine.low %v351_v48, %v355_v49  ;;  %v513_v57 = vrot.slane %v503_v50, %v1875_v31  ;;  %v629_v58 = vrot.slane %v612_v42, %v1851_v22 }
  0xbe   : > { %556 = vperm.xlu1 %1675, %v453_v51   ;;  %v520_v60 = vrot.slane %v504_v53, %v1875_v31  ;;  %v527_v61 = vrot.slane %v505_v54, %v1875_v31  ;;  %v633_v62 = vrot.slane %v612_v42, %v1854_v23  ;;  %v637_v63 = vrot.slane %v612_v42, %v1857_v24 }
  0xbf   : > { %v502_v0 = vcombine.low %v494_v52, %v501_v55  ;;  %v534_v1 = vrot.slane %v506_v56, %v1875_v31  ;;  %v641_v2 = vrot.slane %v612_v42, %v1860_v25  ;;  %v645_v3 = vrot.slane %v612_v42, %v1863_v26  ;;  %v621_v52 = vpop.xlane.xlu1 %620 }
  0xc0   : > { %v535_v4 = vcombine.low %v513_v57, %v520_v60  ;;  %v649_v5 = vrot.slane %v612_v42, %v1866_v27  ;;  %v653_v6 = vrot.slane %v612_v42, %v1869_v28  ;;  %v657_v7 = vrot.slane %v612_v42, %v1872_v29 }
  0xc1   : > { %v536_v8 = vcombine.low %v527_v61, %v534_v1  ;;  %v754_v9 = vcombine.low %v629_v58, %v633_v62  ;;  %v755_v10 = vcombine.low %v637_v63, %v641_v2  ;;  %v661_v11 = vrot.slane %v615_v59, %v1851_v22 }
  0xc2   : > { %559 = vperm.xlu1 %1675, %v502_v0   ;;  %v543_v12 = vrot.slane %v535_v4, %v1875_v31  ;;  %v756_v13 = vcombine.low %v645_v3, %v649_v5  ;;  %v757_v14 = vcombine.low %v653_v6, %v657_v7  ;;  %v665_v15 = vrot.slane %v615_v59, %v1854_v23 }
  0xc3   : > { %v550_v16 = vrot.slane %v536_v8, %v1875_v31  ;;  %v764_v18 = vrot.slane %v754_v9, %v1875_v31  ;;  %v771_v19 = vrot.slane %v755_v10, %v1875_v31  ;;  %v669_v21 = vrot.slane %v615_v59, %v1857_v24 }
  0xc4   : > { %v778_v33 = vrot.slane %v756_v13, %v1875_v31  ;;  %v785_v34 = vrot.slane %v757_v14, %v1875_v31  ;;  %v673_v35 = vrot.slane %v615_v59, %v1860_v25  ;;  %v677_v36 = vrot.slane %v615_v59, %v1863_v26 }
  0xc5   : > { %v551_v37 = vcombine.low %v543_v12, %v550_v16  ;;  %v786_v32 = vcombine.low %v764_v18, %v771_v19  ;;  %v681_v38 = vrot.slane %v615_v59, %v1866_v27  ;;  %v685_v39 = vrot.slane %v615_v59, %v1869_v28 }
  0xc6   : > { %v787_v40 = vcombine.low %v778_v33, %v785_v34  ;;  %v689_v41 = vrot.slane %v615_v59, %v1872_v29  ;;  %v803_v42 = vcombine.low %v661_v11, %v665_v15  ;;  %v804_v43 = vcombine.low %v669_v21, %v673_v35 }
  0xc7   : > { %562 = vperm.xlu1 %1675, %v551_v37   ;;  %v794_v44 = vrot.slane %v786_v32, %v1875_v31  ;;  %v805_v45 = vcombine.low %v677_v36, %v681_v38  ;;  %v693_v46 = vrot.slane %v618_v30, %v1851_v22  ;;  %v697_v47 = vrot.slane %v618_v30, %v1854_v23  ;;  %v1004_v37 = vld [vmem:[%s2153_s1] sm:$0xff]  ;;  %v1005_v32 = vld [vmem:[%s2153_s1 + $0x8] sm:$0xff] }
  0xc8   : > { %v801_v48 = vrot.slane %v787_v40, %v1875_v31  ;;  %v806_v49 = vcombine.low %v685_v39, %v689_v41  ;;  %v813_v50 = vrot.slane %v803_v42, %v1875_v31  ;;  %v820_v51 = vrot.slane %v804_v43, %v1875_v31 }
  0xc9   : > { %v827_v53 = vrot.slane %v805_v45, %v1875_v31  ;;  %v701_v54 = vrot.slane %v618_v30, %v1857_v24  ;;  %v705_v55 = vrot.slane %v618_v30, %v1860_v25  ;;  %v709_v56 = vrot.slane %v618_v30, %v1863_v26  ;;  %v1007_v45 = vld [vmem:[%s2153_s1 + $0x18] sm:$0xff] }
  0xca   : > { %v802_v57 = vcombine.low %v794_v44, %v801_v48  ;;  %v834_v58 = vrot.slane %v806_v49, %v1875_v31  ;;  %v835_v59 = vcombine.low %v813_v50, %v820_v51  ;;  %v713_v60 = vrot.slane %v618_v30, %v1866_v27  ;;  %v1006_v44 = vld [vmem:[%s2153_s1 + $0x10] sm:$0xff] }
  0xcb   : > { %v717_v61 = vrot.slane %v618_v30, %v1869_v28  ;;  %v721_v62 = vrot.slane %v618_v30, %v1872_v29  ;;  %v852_v63 = vcombine.low %v693_v46, %v697_v47  ;;  %v853_v0 = vcombine.low %v701_v54, %v705_v55 }
  0xcc   : > { %951 = vperm.xlu1 %1675, %v802_v57   ;;  %v836_v1 = vcombine.low %v827_v53, %v834_v58  ;;  %v843_v2 = vrot.slane %v835_v59, %v1875_v31  ;;  %v854_v3 = vcombine.low %v709_v56, %v713_v60  ;;  %v725_v4 = vrot.slane %v621_v52, %v1851_v22 }
  0xcd   : > { %v855_v5 = vcombine.low %v717_v61, %v721_v62  ;;  %v862_v6 = vrot.slane %v852_v63, %v1875_v31  ;;  %v869_v7 = vrot.slane %v853_v0, %v1875_v31  ;;  %v729_v8 = vrot.slane %v621_v52, %v1854_v23 }
  0xce   : > { %v850_v9 = vrot.slane %v836_v1, %v1875_v31  ;;  %v876_v10 = vrot.slane %v854_v3, %v1875_v31  ;;  %v733_v11 = vrot.slane %v621_v52, %v1857_v24  ;;  %v737_v12 = vrot.slane %v621_v52, %v1860_v25 }
  0xcf   : > { %v883_v13 = vrot.slane %v855_v5, %v1875_v31  ;;  %v884_v14 = vcombine.low %v862_v6, %v869_v7  ;;  %v741_v22 = vrot.slane %v621_v52, %v1863_v26  ;;  %v745_v15 = vrot.slane %v621_v52, %v1866_v27 }
  0xd0   : > { %v851_v16 = vcombine.low %v843_v2, %v850_v9  ;;  %v749_v18 = vrot.slane %v621_v52, %v1869_v28  ;;  %v753_v23 = vrot.slane %v621_v52, %v1872_v29  ;;  %v901_v19 = vcombine.low %v725_v4, %v729_v8  ;;  %v1008_v8 = vld [vmem:[%s2154_s2] sm:$0xff]  ;;  %v1009_v9 = vld [vmem:[%s2154_s2 + $0x8] sm:$0xff] }
  0xd1   : > { %v885_v21 = vcombine.low %v876_v10, %v883_v13  ;;  %v892_v30 = vrot.slane %v884_v14, %v1875_v31  ;;  %v902_v33 = vcombine.low %v733_v11, %v737_v12  ;;  %v903_v24 = vcombine.low %v741_v22, %v745_v15  ;;  %v1010_v22 = vld [vmem:[%s2154_s2 + $0x10] sm:$0xff]  ;;  %v1011_v15 = vld [vmem:[%s2154_s2 + $0x18] sm:$0xff] }
  0xd2   : > { %954 = vperm.xlu1 %1675, %v851_v16   ;;  %v904_v25 = vcombine.low %v749_v18, %v753_v23  ;;  %v911_v34 = vrot.slane %v901_v19, %v1875_v31  ;;  %v1553_v39 = vpack.c.bf16 %v1005_v32, %v1004_v37  ;;  %v1762_v41 = vmov 0.0|0.0  }
  0xd3   : > { %v899_v35 = vrot.slane %v885_v21, %v1875_v31  ;;  %v918_v26 = vrot.slane %v902_v33, %v1875_v31  ;;  %v925_v27 = vrot.slane %v903_v24, %v1875_v31  ;;  %1552 = vmatprep.subr.bf16.mxu0 %v1762_v41  ;;  %v1763_v43 = vmov 0.0   ;;  %1558 = vmatprep.subr.bf16.mxu1 %v1762_v41  ;;  %v1012_v33 = vld [vmem:[%s2154_s2 + $0x20] sm:$0xff]  ;;  %v1013_v24 = vld [vmem:[%s2154_s2 + $0x28] sm:$0xff] }
  0xd4   : > { %v932_v28 = vrot.slane %v904_v25, %v1875_v31  ;;  %1554 = vmatpush3.bf16.msra.mxu0 %v1553_v39  ;;  %201 = vst.msk [vmem:[#allocation2] sm:$0x1] %vm200_vm0, %v1763_v43  ;;  %1560 = vmatpush3.bf16.msra.mxu1 %v1553_v39  ;;  %v1764_v47 = vmov -inf   ;;  %v1556_v48 = vpack.c.bf16 %v1007_v45, %v1006_v44  ;;  %v565_v49 = vand.u32 127, %v228_v17  ;;  %v1017_v39 = vld [vmem:[%s2154_s2 + $0x48] sm:$0xff] }
  0xd5   : > { %v900_v36 = vcombine.low %v892_v30, %v899_v35  ;;  %v933_v29 = vcombine.low %v911_v34, %v918_v26  ;;  %1555 = vmatprep.subr.bf16.mxu0 %v1762_v41  ;;  %202 = vst.msk [vmem:[#allocation3] sm:$0x1] %vm200_vm0, %v1764_v47  ;;  %1561 = vmatprep.subr.bf16.mxu1 %v1762_v41  ;;  %v1021_v47 = vld [vmem:[%s2154_s2 + $0x68] sm:$0xff] }
  0xd6   : > { %v934_v38 = vcombine.low %v925_v27, %v932_v28  ;;  %1468 = vmatprep.mubr.msk.f32.mxu0 %vm1765_vm1, %v1763_v43  ;;  %1479 = vmatprep.mubr.msk.f32.mxu1 %vm1765_vm1, %v1763_v43  ;;  %v570_v50 = vadd.s32 4294967288, %v565_v49  ;;  %v577_v51 = vadd.s32 4294967280, %v565_v49  ;;  %v584_v54 = vadd.s32 4294967272, %v565_v49  ;;  %v1014_v28 = vld [vmem:[%s2154_s2 + $0x30] sm:$0xff] }
  0xd7   : > { %957 = vperm.xlu1 %1675, %v900_v36   ;;  %v941_v40 = vrot.slane %v933_v29, %v1875_v31  ;;  %v568_v56 = vsub.s32 %v565_v49, %v1848_v20  ;;  %v1565_v12 = vpack.c.bf16 %v1009_v9, %v1008_v8  ;;  %v1568_v19 = vpack.c.bf16 %v1011_v15, %v1010_v22  ;;  %v1015_v36 = vld [vmem:[%s2154_s2 + $0x38] sm:$0xff] }
  0xd8   : > { %v948_v42 = vrot.slane %v934_v38, %v1875_v31  ;;  %1557 = vmatpush3.bf16.msra.mxu0 %v1556_v48  ;;  %1563 = vmatpush3.bf16.msra.mxu1 %v1556_v48  ;;  %v573_v53 = vsub.s32 %v570_v50, %v1848_v20  ;;  %v580_v55 = vsub.s32 %v577_v51, %v1848_v20  ;;  %v1016_v38 = vld [vmem:[%s2154_s2 + $0x40] sm:$0xff]  ;;  %v1023_v49 = vld [vmem:[%s2154_s2 + $0x78] sm:$0xff] }
  0xd9   : > { %1588 = vmatprep.subr.bf16.mxu0 %v1762_v41  ;;  %1564 = vmatprep.subr.bf16.mxu1 %v1762_v41  ;;  %v587_v60 = vsub.s32 %v584_v54, %v1848_v20  ;;  %v1571_v26 = vpack.c.bf16 %v1013_v24, %v1012_v33  ;;  %v1574_v32 = vpack.c.bf16 %v1015_v36, %v1014_v28 }
  0xda   : > { %v949_v46 = vcombine.low %v941_v40, %v948_v42  ;;  %v1577_v40 = vpack.c.bf16 %v1017_v39, %v1016_v38  ;;  %v1019_v42 = vld [vmem:[%s2154_s2 + $0x58] sm:$0xff] }
  0xdb   : > { %v211_v5 = vld [vmem:[#allocation2] sm:$0x1] }
  0xdc   : > { %960 = vperm.xlu1 %1675, %v949_v46   ;;  %v609_v27 = vld [vmem:[#allocation3] sm:$0x1] }
  0xdd   : > { %v1020_v46 = vld [vmem:[%s2154_s2 + $0x60] sm:$0xff] }
  0xde   : > { %v1583_v48 = vpack.c.bf16 %v1021_v47, %v1020_v46 }
 0x137   : > { %v554_v58 = vpop.permute.xlu0 %553 }
 0x138   : > { %v569_v62 = vrot.slane %v554_v58, %v568_v56 }
 0x13d   : > { %v557_v52 = vpop.permute.xlu1 %556 }
 0x13e   : > { %v574_v59 = vrot.slane %v557_v52, %v573_v53 }
 0x140   : > { %v576_v63 = vsel %vm575_vm2, %v574_v59, %v569_v62 }
 0x141   : > { %v560_v57 = vpop.permute.xlu1 %559 }
 0x142   : > { %v581_v61 = vrot.slane %v560_v57, %v580_v55 }
 0x144   : > { %v583_v1 = vsel %vm582_vm3, %v581_v61, %v576_v63 }
 0x146   : > { %v563_v17 = vpop.permute.xlu1 %562 }
 0x147   : > { %v588_v0 = vrot.slane %v563_v17, %v587_v60 }
 0x149   : > { %v590_v2 = vsel %vm589_vm4, %v588_v0, %v583_v1 }
 0x14a   : > { %v597_v3 = vrot.slane %v590_v2, %v1875_v31 }
 0x14b   : > { %v952_v4 = vpop.permute.xlu1 %951 }
 0x14c   : > { %v604_v6 = vrot.slane %v597_v3, %v1875_v31  ;;  %v965_v18 = vrot.slane %v952_v4, %v568_v56 }
 0x14e   : > { %v606_v20 = vadd.f32 %v604_v6, %v211_v5 }
 0x150   : > { %608 = vst.msk [vmem:[#allocation2] sm:$0x1] %vm200_vm0, %v606_v20 }
 0x151   : > { %v955_v7 = vpop.permute.xlu1 %954 }
 0x152   : > { %v969_v13 = vrot.slane %v955_v7, %v573_v53 }
 0x154   : > { %v970_v21 = vsel %vm575_vm2, %v969_v13, %v965_v18 }
 0x156   : > { %v958_v10 = vpop.permute.xlu1 %957 }
 0x157   : > { %v1001_v11 = vld [vmem:[#allocation2] sm:$0x1]  ;;  %v974_v16 = vrot.slane %v958_v10, %v580_v55 }
 0x158   : > { %v1002_v14 = vmul.f32 0.00390625, %v1001_v11 }
 0x159   : > { %v975_v25 = vsel %vm582_vm3, %v974_v16, %v970_v21 }
 0x15a   : > { %1469 = vmatmul.mubr.msk.f32.vlgmr.msra.gmra.mrb[0].mxu0 %vm1024_vm5, %v1002_v14 }
 0x15b   : > { %v961_v23 = vpop.permute.xlu1 %960  ;;  %1590 = vmatpush3.bf16.msra.mxu0 %v1565_v12  ;;  %1549 = vmatprep.mubr.msk.f32.mxu0 %vm1765_vm1, %v1763_v43 }
 0x15c   : > { %v979_v30 = vrot.slane %v961_v23, %v587_v60  ;;  %1591 = vmatprep.subr.bf16.mxu0 %v1762_v41 }
 0x15e   : > { %v980_v34 = vsel %vm589_vm4, %v979_v30, %v975_v25 }
 0x15f   : > { %v987_v35 = vrot.slane %v980_v34, %v1875_v31  ;;  %1593 = vmatpush3.bf16.msra.mxu0 %v1568_v19 }
 0x160   : > { %1594 = vmatprep.subr.bf16.mxu0 %v1762_v41 }
 0x161   : > { %v994_v29 = vrot.slane %v987_v35, %v1875_v31  ;;  %v1018_v31 = vld [vmem:[%s2154_s2 + $0x50] sm:$0xff] }
 0x162   : > { %v1580_v44 = vpack.c.bf16 %v1019_v42, %v1018_v31 }
 0x163   : > { %v996_v37 = vmax.f32 %v609_v27, %v994_v29  ;;  %1596 = vmatpush3.bf16.msra.mxu0 %v1571_v26 }
 0x164   : > { %1597 = vmatprep.subr.bf16.mxu0 %v1762_v41 }
 0x165   : > { %997 = vst.msk [vmem:[#allocation3] sm:$0x1] %vm200_vm0, %v996_v37 }
 0x167   : > { %1599 = vmatpush3.bf16.msra.mxu0 %v1574_v32 }
 0x168   : > { %1600 = vmatprep.subr.bf16.mxu0 %v1762_v41 }
 0x16b   : > { %1602 = vmatpush3.bf16.msra.mxu0 %v1577_v40 }
 0x16c   : > { %v1003_v45 = vld [vmem:[#allocation3] sm:$0x1]  ;;  %1603 = vmatprep.subr.bf16.mxu0 %v1762_v41 }
 0x16d   : > { %1480 = vmatmul.mubr.msk.f32.vlgmr.msra.gmra.mrb[0].mxu1 %vm1024_vm5, %v1003_v45 }
 0x16e   : > { %1566 = vmatpush3.bf16.msra.mxu1 %v1565_v12  ;;  %1514 = vmatprep.mubr.msk.f32.mxu1 %vm1765_vm1, %v1763_v43  ;;  %v1022_v43 = vld [vmem:[%s2154_s2 + $0x70] sm:$0xff] }
 0x16f   : > { %1567 = vmatprep.subr.bf16.mxu1 %v1762_v41  ;;  %1605 = vmatpush3.bf16.msra.mxu0 %v1580_v44  ;;  %v1586_v50 = vpack.c.bf16 %v1023_v49, %v1022_v43 }
 0x170   : > { %1606 = vmatprep.subr.bf16.mxu0 %v1762_v41 }
 0x172   : > { %1569 = vmatpush3.bf16.msra.mxu1 %v1568_v19 }
 0x173   : > { %1570 = vmatprep.subr.bf16.mxu1 %v1762_v41  ;;  %1608 = vmatpush3.bf16.msra.mxu0 %v1583_v48 }
 0x174   : > { %1609 = vmatprep.subr.bf16.mxu0 %v1762_v41 }
 0x176   : > { %1572 = vmatpush3.bf16.msra.mxu1 %v1571_v26 }
 0x177   : > { %1573 = vmatprep.subr.bf16.mxu1 %v1762_v41  ;;  %1611 = vmatpush3.bf16.msra.mxu0 %v1586_v50 }
 0x17a   : > { %1575 = vmatpush3.bf16.msra.mxu1 %v1574_v32 }
 0x17b   : > { %1576 = vmatprep.subr.bf16.mxu1 %v1762_v41 }
 0x17e   : > { %1578 = vmatpush3.bf16.msra.mxu1 %v1577_v40 }
 0x17f   : > { %1579 = vmatprep.subr.bf16.mxu1 %v1762_v41 }
 0x182   : > { %1581 = vmatpush3.bf16.msra.mxu1 %v1580_v44 }
 0x183   : > { %1582 = vmatprep.subr.bf16.mxu1 %v1762_v41 }
 0x186   : > { %1584 = vmatpush3.bf16.msra.mxu1 %v1583_v48 }
 0x187   : > { %1585 = vmatprep.subr.bf16.mxu1 %v1762_v41 }
 0x18a   : > { %1587 = vmatpush3.bf16.msra.mxu1 %v1586_v50 }
 0x22d   : > { %v1094_v51 = vpop.f32.mrb[0].mxu0 }
 0x22e   : > { %v1098_v52 = vmax.f32 %v1094_v51, 0.0  ;;  %v1470_v53 = vpop.f32.mrb[1].mxu0 }
 0x230   : > { %1550 = vmatmul.mubr.f32.vlgmr.msra.gmra.mrb[2].mxu0 %v1098_v52 }
 0x240   : > { %v1168_v54 = vpop.f32.mrb[0].mxu1 }
 0x241   : > { %v1172_v55 = vmax.f32 %v1168_v54, 0.0  ;;  %v1481_v41 = vpop.f32.mrb[1].mxu1 }
 0x243   : > { %1515 = vmatmul.mubr.f32.vlgmr.msra.gmra.mrb[2].mxu1 %v1172_v55 }
 0x303   : > { %v1309_v56 = vpop.f32.mrb[2].mxu0 }
 0x304   : > { %v1551_v57 = vpop.f32.mrb[3].mxu0 }
 0x316   : > { %v1239_v58 = vpop.f32.mrb[2].mxu1 }
 0x317   : > { %v1310_v59 = vadd.f32 %v1309_v56, %v1239_v58  ;;  %v1516_v60 = vpop.f32.mrb[3].mxu1 }
 0x319   : > { %v1411_v61 = vmul.f32 -1.442695, %v1310_v59 }
 0x31b   : > { %1676 = vpow2.f32 %v1411_v61 }
 0x325   : > { %v1677_v62 = vpop.eup %1676 }
 0x326   : > { %v1316_v17 = vadd.f32 1.0, %v1677_v62 }
 0x328   : > { %1678 = vrcp.f32 %v1316_v17 }
 0x332   : > { %v1679_v63 = vpop.eup %1678 }
 0x333   : > { %1319 = vst.msk [vmem:[%s185_s18] sm:$0x1] %vm200_vm0, %v1679_v63 }
 0x334   : > { %1693 = shalt.err (!%p1690_p5)
}
 0x335   : > { %s1694_s4 = scalar_lea.hbm %s2104_s26, 16  ;;  %s1698_s7 = scalar_lea.hbm %s2155_s3, 32 }
 0x336   : > { %p1695_p6 = scmp.ne.s32.totalorder %s2104_s26, %s1694_s4  ;;  %p1699_p10 = scmp.lt.u32.totalorder %s2104_s26, %s2155_s3 }
 0x337   : > { %p1700_p11 = scmp.lt.u32.totalorder %s1698_s7, %s1694_s4  ;;  %p1702_p13 = scmp.lt.u32.totalorder %s1694_s4, %s2104_s26 }
 0x338   : > { %p1696_p7 = pnand %p1695_p6, %p1827_p4 }
 0x339   : > { %p1701_p12 = por %p1700_p11, %p1699_p10 }
 0x33a   : > { %p1697_p9 = pneg %p1696_p7 }
 0x33b   : > { %p1703_p0 = por %p1702_p13, %p1701_p12 }
 0x33d   : > { %p1704_p1 = pnand %p1703_p0, %p1697_p9 }
 0x33f   : > { %1707 = shalt.err (!%p1704_p1)
}
 0x340   : > { %1613 = dma.vmem_to_hbm [thread:$0]  (%p1827_p4), %s2106_s19, 16, %s2104_s26, %s1321_s27  }
 0x341 PF: > { %p1619_p2 = scmp.ge.s32.totalorder %s1758_s17, 2  ;;  %s1345_s10 = sand.u32 1, %s1738_s12  }
 0x342   : > { %s1346_s11 = scalar_lea.sflag [#allocation5], %s1345_s10 }
 0x343   : > { %p1616_p3 = pnand %p1619_p2, %p1834_p8 }
 0x345   : > { %1733 = dma.done.wait (!%p1616_p3), %s1346_s11, 16  }
 0x346   : > { %1735 = vsyncadd (!%p1616_p3), %s1346_s11, 4294967280  ;;  %s16_s17 = sadd.s32 1, %s1758_s17   ;;  %s2158_s12 = smov %s1742_s13 }
 0x347   : > { %p13_p5 = scmp.ge.s32.totalorder %s16_s17, 4   ;;  %s2159_s13 = smov %s1746_s14 }
 0x348   : > { %s2160_s14 = smov %s1840_s25  ;;  %s2161_s15 = smov %s1754_s16 }
 0x349   : > { %s2162_s16 = smov %s2164_s20  ;;  %15 = sbr.rel (!%p13_p5) target bundleno = 4 (0x4), region = 75 }
 0x350   :  { %1350 = vsyncpa [#allocation5], 1 }
 0x351   :  { %1352 = vsyncpa [#allocation5 + $0x1], 1 }

</bundles_post_ra>
